<compile_context>
chip_gen: v6e
topology: v6e:2x2x1
jax: 0.10.0
libtpu: 0.0.40
codegen_flags: <defaults>
</compile_context>

<pallas_src>
import jax
import jax.numpy as jnp
from jax import lax
from jax.experimental import pallas as pl
from jax.experimental.pallas import tpu as pltpu


def _vmem_capacity_bytes():
    try:
        return int(pltpu.get_tpu_info().vmem_capacity_bytes)
    except Exception:
        return 64 << 20  # conservative (v7x per-TC)


def _choose_block_k(K, D, itemsize):
    """Largest K-slab per grid step whose double-buffered W2d block fits the budget."""
    cap = _vmem_capacity_bytes()
    budget = max(cap // 3, 16 << 20)
    full_bytes = K * D * D * itemsize
    if 2 * full_bytes <= budget:
        return K  # whole W2d resident; single step, no pipelining overhead
    best = None
    for gk in range(K - 1, 0, -1):
        if K % gk:
            continue
        if (gk * D) % 128:      # streamed block must be lane-aligned (128)
            continue
        if 2 * gk * D * D * itemsize <= budget:
            best = gk
            break
    return best if best is not None else K


def ntn_prepare_params(w_bil, b_bil, w_lin, b_lin, *, block_k=None,
                       weights_dtype=jnp.float32):
    """One-time layout preparation (hoisted OFF the per-forward critical path).

    Returns a dict consumed by ntn_apply().  Call once per parameter set.
    """
    K, D, D2 = w_bil.shape
    assert D == D2, "bilinear weight must be (K, D, D)"
    assert w_lin.shape == (K, 2 * D), "linear weight must be (K, 2*D)"

    itemsize = jnp.dtype(weights_dtype).itemsize
    gk = block_k if block_k is not None else _choose_block_k(K, D, itemsize)
    assert K % gk == 0 and (gk == K or (gk * D) % 128 == 0), (
        f"invalid block_k={gk} for K={K}, D={D}")
    nblk = K // gk

    # W2d[i, k*D + j] = W_bil[k, i, j]  -> one lane-dense MXU contraction over i.
    w2d = jnp.transpose(w_bil, (1, 0, 2)).reshape(D, K * D).astype(weights_dtype)

    # Packed linear operand: rows [0:D) = W_lin x1-half (transposed),
    # rows [D:2D) = x2-half (transposed), row 2D = fused bias.  Then laid out per
    # K-slab as (nblk, 2*D+1, gk) so the streamed grid can block it with full-extent
    # last-two dims (no dynamic lane slicing in the kernel).
    w1 = w_lin[:, :D].T                                  # (D, K)
    w2 = w_lin[:, D:].T                                  # (D, K)
    b = (b_bil + b_lin).reshape(1, K)                    # fused bias
    packed = jnp.concatenate([w1, w2, b], axis=0)        # (2*D+1, K)
    packed = packed.reshape(2 * D + 1, nblk, gk).transpose(1, 0, 2)  # (nblk, 2D+1, gk)
    packed = packed.astype(weights_dtype)

    return dict(w2d=w2d, wl=packed, D=D, K=K, gk=gk)


def _make_ntn_kernel(D, gk):
    def kernel(x1_ref, x2_ref, w2d_ref, wl_ref, o_ref):
        x1 = x1_ref[...]                                 # (B, D) f32, resident
        x2 = x2_ref[...]                                 # (B, D) f32, resident

        # ---- Bilinear slab: one MXU contraction over i, VPU multiply with the
        #      in-kernel lane-tiled x2, then a per-D-group reduction.
        t = jnp.dot(x1, w2d_ref[...], preferred_element_type=jnp.float32)  # (B, gk*D)
        x2_tiled = x2 if gk == 1 else jnp.tile(x2, (1, gk))                # no HBM DMA
        p = t * x2_tiled                                                   # (B, gk*D)
        if gk == 1:
            bil = jnp.sum(p, axis=-1, keepdims=True)                       # XLU reduce
        else:
            row = lax.broadcasted_iota(jnp.int32, (gk * D, gk), 0)
            col = lax.broadcasted_iota(jnp.int32, (gk * D, gk), 1)
            s = (row // D == col).astype(jnp.float32)                      # in-kernel S
            bil = jnp.dot(p, s, preferred_element_type=jnp.float32)        # (B, gk)

        # ---- Linear slab on cat(x1, x2): pre-split / pre-transposed halves plus the
        #      fused bias, recovered from ONE packed operand via static ref slices.
        w1 = wl_ref[0:D, :]                              # (D, gk)
        w2 = wl_ref[D:2 * D, :]                          # (D, gk)
        bias = wl_ref[2 * D:2 * D + 1, :].astype(jnp.float32)  # (1, gk)
        lin = (jnp.dot(x1, w1, preferred_element_type=jnp.float32)
               + jnp.dot(x2, w2, preferred_element_type=jnp.float32))      # (B, gk)

        o_ref[...] = jnp.tanh(bil + lin + bias).astype(o_ref.dtype)
    return kernel


def ntn_apply(x1, x2, params):
    """Steady-state forward pass; no weight relayout on this path."""
    D, K, gk = params["D"], params["K"], params["gk"]
    w2d, wl = params["w2d"], params["wl"]
    B = x1.shape[0]
    assert x1.shape == (B, D) and x2.shape == (B, D)
    nblk = K // gk

    # VMEM budget: resident activations + (double-buffered when streaming) per-step
    # blocks + headroom, capped below the queried per-chip VMEM capacity.
    w_itemsize = jnp.dtype(w2d.dtype).itemsize
    blk_bytes = (D * gk * D) * w_itemsize + (2 * D + 1) * gk * w_itemsize + B * gk * 4
    resident = (x1.size + x2.size) * jnp.dtype(x1.dtype).itemsize
    nbuf = 2 if nblk > 1 else 1
    cap = _vmem_capacity_bytes()
    vmem_limit = int(min(max(resident + nbuf * blk_bytes + (4 << 20), 8 << 20),
                         cap - (8 << 20)))

    out = pl.pallas_call(
        _make_ntn_kernel(D, gk),
        out_shape=jax.ShapeDtypeStruct((nblk, B, gk), jnp.float32),
        grid=(nblk,),
        in_specs=[
            pl.BlockSpec((B, D), lambda c: (0, 0)),                      # x1 (resident)
            pl.BlockSpec((B, D), lambda c: (0, 0)),                      # x2 (resident)
            pl.BlockSpec((D, gk * D), lambda c: (0, c)),                 # streamed W2d slab
            pl.BlockSpec((None, 2 * D + 1, gk), lambda c: (c, 0, 0)),    # packed lin + bias
        ],
        out_specs=pl.BlockSpec((None, B, gk), lambda c: (c, 0, 0)),
        compiler_params=pltpu.CompilerParams(
            dimension_semantics=("parallel",),
            vmem_limit_bytes=vmem_limit,
        ),
    )(x1, x2, w2d, wl)

    # (nblk, B, gk) -> (B, K); trivial when nblk == 1.
    return jnp.transpose(out, (1, 0, 2)).reshape(B, K)


def ntn_forward(x1, x2, w_bil, b_bil, w_lin, b_lin, **kwargs):
    """Convenience wrapper (relayout + apply).  Hot paths should prepare once."""
    return ntn_apply(x1, x2, ntn_prepare_params(w_bil, b_bil, w_lin, b_lin, **kwargs))


def ntn_reference(x1, x2, w_bil, b_bil, w_lin, b_lin):
    """Pure-JAX reference matching nn.Bilinear / nn.Linear semantics."""
    hp = jax.lax.Precision.HIGHEST
    bil = jnp.einsum('bi,kij,bj->bk', x1, w_bil, x2, precision=hp) + b_bil[None, :]
    lin = jnp.dot(jnp.concatenate([x1, x2], axis=1), w_lin.T,
                  precision=hp) + b_lin[None, :]
    return jnp.tanh(bil + lin)


if __name__ == "__main__":
    def run_case(B, D, K, *, block_k=None, weights_dtype=jnp.float32, tol=1e-5, seed=0):
        key = jax.random.PRNGKey(seed)
        k_x1, k_x2, k_wb, k_bb, k_wl, k_bl = jax.random.split(key, 6)
        x1 = jax.random.normal(k_x1, (B, D), dtype=jnp.float32)
        x2 = jax.random.normal(k_x2, (B, D), dtype=jnp.float32)
        bound_bil = 1.0 / (D ** 0.5)
        bound_lin = 1.0 / ((2 * D) ** 0.5)
        w_bil = jax.random.uniform(k_wb, (K, D, D), jnp.float32, -bound_bil, bound_bil)
        b_bil = jax.random.uniform(k_bb, (K,), jnp.float32, -bound_bil, bound_bil)
        w_lin = jax.random.uniform(k_wl, (K, 2 * D), jnp.float32, -bound_lin, bound_lin)
        b_lin = jax.random.uniform(k_bl, (K,), jnp.float32, -bound_lin, bound_lin)

        # One-time relayout, then the steady-state forward call.
        params = ntn_prepare_params(w_bil, b_bil, w_lin, b_lin,
                                    block_k=block_k, weights_dtype=weights_dtype)
        out = jax.block_until_ready(ntn_apply(x1, x2, params))

        if weights_dtype == jnp.float32:
            ref = ntn_reference(x1, x2, w_bil, b_bil, w_lin, b_lin)
        else:
            ref = ntn_reference(
                x1, x2,
                w_bil.astype(weights_dtype).astype(jnp.float32), b_bil,
                w_lin.astype(weights_dtype).astype(jnp.float32), b_lin)

        assert out.shape == (B, K), out.shape
        assert jnp.allclose(out, ref, atol=tol, rtol=tol), (
            f"mismatch B={B} D={D} K={K} gk={params['gk']} dtype={weights_dtype}")

    # 1) Module-consistent small default: tsr_size=1 (K==1 XLU-reduce path, one step).
    run_case(B=8, D=32, K=1, tol=1e-5, seed=0)
    # 2) Module default inp_size=256 with a forced W2d column-streaming grid
    #    (2 'parallel' steps, 512-lane blocks, in-kernel tile + iota block-sum).
    run_case(B=8, D=256, K=4, block_k=2, tol=1e-3, seed=1)
    # 3) bf16 weight operands (halves W2d HBM traffic in the mem-bound regime).
    run_case(B=8, D=256, K=4, weights_dtype=jnp.bfloat16, tol=1e-2, seed=2)

    print("KERNEL_OK")
</pallas_src>

<mosaic_0001>
module attributes {stable_mosaic.version = 11 : i64} {
  func.func @kernel(%arg0: i32, %arg1: memref<8x32xf32, #tpu.memory_space<vmem>>, %arg2: memref<8x32xf32, #tpu.memory_space<vmem>>, %arg3: memref<32x32xf32, #tpu.memory_space<vmem>>, %arg4: memref<1x65x1xf32, #tpu.memory_space<vmem>>, %arg5: memref<1x8x1xf32, #tpu.memory_space<vmem>>) attributes {dimension_semantics = [#tpu.dimension_semantics<parallel>], iteration_bounds = array<i64: 1>, scalar_prefetch = 0 : i64, scratch_operands = 0 : i64, tpu.core_type = #tpu.core_type<tc>, window_params = [{pipeline_mode = #tpu.pipeline_mode<synchronous>, transform_indices = @transform_0, window_bounds = array<i64: 8, 32>}, {pipeline_mode = #tpu.pipeline_mode<synchronous>, transform_indices = @transform_1, window_bounds = array<i64: 8, 32>}, {transform_indices = @transform_2, window_bounds = array<i64: 32, 32>}, {transform_indices = @transform_3, window_bounds = array<i64: 1, 65, 1>}, {transform_indices = @transform_4, window_bounds = array<i64: 1, 8, 1>}]} {
    %c0 = arith.constant 0 : index
    %c0_0 = arith.constant 0 : index
    %0 = vector.load %arg1[%c0, %c0_0] : memref<8x32xf32, #tpu.memory_space<vmem>>, vector<8x32xf32>
    %c0_1 = arith.constant 0 : index
    %c0_2 = arith.constant 0 : index
    %1 = vector.load %arg2[%c0_1, %c0_2] : memref<8x32xf32, #tpu.memory_space<vmem>>, vector<8x32xf32>
    %c0_3 = arith.constant 0 : index
    %c0_4 = arith.constant 0 : index
    %2 = vector.load %arg3[%c0_3, %c0_4] : memref<32x32xf32, #tpu.memory_space<vmem>>, vector<32x32xf32>
    %cst = arith.constant dense<0.000000e+00> : vector<8x32xf32>
    %3 = tpu.matmul %0, %2, %cst {dimension_numbers = #tpu.dot_dimension_numbers<[1], [0], [0], [1], [0, 0, 1, 1], [], []>} : vector<8x32xf32>, vector<32x32xf32>, vector<8x32xf32> -> vector<8x32xf32>
    %4 = arith.mulf %3, %1 : vector<8x32xf32>
    %cst_5 = arith.constant dense<0.000000e+00> : vector<8xf32>
    %5 = vector.multi_reduction <add>, %4, %cst_5 [1] : vector<8x32xf32> to vector<8xf32>
    %6 = vector.shape_cast %5 : vector<8xf32> to vector<8x1xf32>
    %c0_6 = arith.constant 0 : index
    %c0_7 = arith.constant 0 : index
    %c0_8 = arith.constant 0 : index
    %7 = vector.load %arg4[%c0_6, %c0_7, %c0_8] : memref<1x65x1xf32, #tpu.memory_space<vmem>>, vector<1x32x1xf32>
    %8 = vector.shape_cast %7 : vector<1x32x1xf32> to vector<32x1xf32>
    %c0_9 = arith.constant 0 : index
    %c32 = arith.constant 32 : index
    %c0_10 = arith.constant 0 : index
    %9 = vector.load %arg4[%c0_9, %c32, %c0_10] : memref<1x65x1xf32, #tpu.memory_space<vmem>>, vector<1x32x1xf32>
    %10 = vector.shape_cast %9 : vector<1x32x1xf32> to vector<32x1xf32>
    %c0_11 = arith.constant 0 : index
    %c64 = arith.constant 64 : index
    %c0_12 = arith.constant 0 : index
    %11 = vector.load %arg4[%c0_11, %c64, %c0_12] : memref<1x65x1xf32, #tpu.memory_space<vmem>>, vector<1x1x1xf32>
    %12 = vector.shape_cast %11 : vector<1x1x1xf32> to vector<1x1xf32>
    %cst_13 = arith.constant dense<0.000000e+00> : vector<8x1xf32>
    %13 = tpu.matmul %0, %8, %cst_13 {dimension_numbers = #tpu.dot_dimension_numbers<[1], [0], [0], [1], [0, 0, 1, 1], [], []>} : vector<8x32xf32>, vector<32x1xf32>, vector<8x1xf32> -> vector<8x1xf32>
    %cst_14 = arith.constant dense<0.000000e+00> : vector<8x1xf32>
    %14 = tpu.matmul %1, %10, %cst_14 {dimension_numbers = #tpu.dot_dimension_numbers<[1], [0], [0], [1], [0, 0, 1, 1], [], []>} : vector<8x32xf32>, vector<32x1xf32>, vector<8x1xf32> -> vector<8x1xf32>
    %15 = arith.addf %13, %14 : vector<8x1xf32>
    %16 = arith.addf %6, %15 : vector<8x1xf32>
    %17 = vector.broadcast %12 : vector<1x1xf32> to vector<8x1xf32>
    %18 = arith.addf %16, %17 : vector<8x1xf32>
    %19 = math.tanh %18 : vector<8x1xf32>
    %c0_15 = arith.constant 0 : index
    %c0_16 = arith.constant 0 : index
    %c0_17 = arith.constant 0 : index
    %20 = vector.load %arg5[%c0_15, %c0_16, %c0_17] : memref<1x8x1xf32, #tpu.memory_space<vmem>>, vector<1x8x1xf32>
    %21 = vector.shape_cast %20 : vector<1x8x1xf32> to vector<8x1xf32>
    %22 = vector.shape_cast %19 : vector<8x1xf32> to vector<1x8x1xf32>
    tpu.vector_store %arg5[%c0_15, %c0_16, %c0_17], %22 {strides = array<i32>} : memref<1x8x1xf32, #tpu.memory_space<vmem>>, vector<1x8x1xf32>,
    return
  }
  func.func @transform_0(%arg0: i32) -> (i32, i32) {
    %c0_i32 = arith.constant 0 : i32
    %c0_i32_0 = arith.constant 0 : i32
    %c0_i32_1 = arith.constant 0 : i32
    return %c0_i32, %c0_i32_0 : i32, i32
  }
  func.func @transform_1(%arg0: i32) -> (i32, i32) {
    %c0_i32 = arith.constant 0 : i32
    %c0_i32_0 = arith.constant 0 : i32
    %c0_i32_1 = arith.constant 0 : i32
    return %c0_i32, %c0_i32_0 : i32, i32
  }
  func.func @transform_2(%arg0: i32) -> (i32, i32) {
    %c0_i32 = arith.constant 0 : i32
    %c0_i32_0 = arith.constant 0 : i32
    return %c0_i32, %arg0 : i32, i32
  }
  func.func @transform_3(%arg0: i32) -> (i32, i32, i32) {
    %c0_i32 = arith.constant 0 : i32
    %c0_i32_0 = arith.constant 0 : i32
    %c0_i32_1 = arith.constant 0 : i32
    return %arg0, %c0_i32, %c0_i32_0 : i32, i32, i32
  }
  func.func @transform_4(%arg0: i32) -> (i32, i32, i32) {
    %c0_i32 = arith.constant 0 : i32
    %c0_i32_0 = arith.constant 0 : i32
    %c0_i32_1 = arith.constant 0 : i32
    return %arg0, %c0_i32, %c0_i32_0 : i32, i32, i32
  }
}

</mosaic_0001>

<bundles_post_ra>
// kernel: tpu_custom_call.1
= control target key start
LH: loop header
LB: loop body
LE: loop exit
PB: predicated region body
PF: predicated region fallthrough
CT: control target
= control target key end

     0   :  { %v322_v0 = vmov 0.0   ;;  %vm323_vm0 = vmmov 0   ;;  %vm23_vm1 = vcmask 261120   ;;  %vm260_vm2 = vcmask 7168   ;;  %s404_s2 = inlined_call_operand.vmem [shape: f32[32,32], index: 2, kind: input, shape index: {}]   ;;  %s405_s3 = inlined_call_operand.vmem [shape: f32[1,65,1], index: 3, kind: input, shape index: {}]   ;;  %s406_s0 = inlined_call_operand.vmem [shape: f32[8,32], index: 0, kind: input, shape index: {}]   ;;  %s407_s1 = inlined_call_operand.vmem [shape: f32[8,32], index: 1, kind: input, shape index: {}]   ;;  %s408_s4 = inlined_call_operand.vmem [shape: f32[1,8,1], index: 4, kind: output, shape index: {}]  }
   0x1   :  { %285 = vmatprep.subr.mxu0 %v322_v0  ;;  %v22_v1 = vld [vmem:[%s404_s2 + $0x18] sm:$0xff]  ;;  %v21_v2 = vld [vmem:[%s404_s2 + $0x10] sm:$0xff]  ;;  %293 = vmatprep.mubr.msk.f32.mxu0 %vm323_vm0, %v322_v0  ;;  %v20_v4 = vld [vmem:[%s404_s2 + $0x8] sm:$0xff] }
   0x2   :  { %286 = vmatpush3.msra.mxu0 %v22_v1  ;;  %296 = vmatprep.subr.mxu1 %v322_v0  ;;  %v108_v3 = vld [vmem:[%s405_s3 + $0x38] sm:$0xff]  ;;  %v107_v5 = vld [vmem:[%s405_s3 + $0x30] sm:$0xff]  ;;  %v106_v6 = vld [vmem:[%s405_s3 + $0x28] sm:$0xff] }
   0x3   :  { %287 = vmatprep.subr.mxu0 %v322_v0  ;;  %297 = vmatpush3.msra.mxu1 %v108_v3  ;;  %v19_v7 = vld [vmem:[%s404_s2] sm:$0xff]  ;;  %v104_v9 = vld [vmem:[%s405_s3 + $0x18] sm:$0xff]  ;;  %v103_v11 = vld [vmem:[%s405_s3 + $0x10] sm:$0xff] }
   0x4   :  { %288 = vmatpush3.msra.mxu0 %v21_v2  ;;  %298 = vmatprep.subr.mxu1 %v322_v0  ;;  %v17_v8 = vld [vmem:[%s406_s0] sm:$0xff]  ;;  %v102_v13 = vld [vmem:[%s405_s3 + $0x8] sm:$0xff] }
   0x5   :  { %289 = vmatprep.subr.mxu0 %v322_v0  ;;  %299 = vmatpush3.msra.mxu1 %v107_v5  ;;  %v105_v10 = vld [vmem:[%s405_s3 + $0x20] sm:$0xff] }
   0x6   :  { %290 = vmatpush3.msra.mxu0 %v20_v4  ;;  %300 = vmatprep.subr.mxu1 %v322_v0  ;;  %v18_v12 = vld [vmem:[%s407_s1] sm:$0xff] }
   0x7   :  { %291 = vmatprep.subr.mxu0 %v322_v0  ;;  %301 = vmatpush3.msra.mxu1 %v106_v6  ;;  %v101_v14 = vld [vmem:[%s405_s3] sm:$0xff] }
   0x8   :  { %292 = vmatpush3.msra.mxu0 %v19_v7  ;;  %302 = vmatprep.subr.mxu1 %v322_v0  ;;  %v269_v25 = vld [vmem:[%s405_s3 + $0x40] ss:$0 sm:$0xff] }
   0x9   :  { %294 = vmatmul.mubr.msk.f32.vlgmr.msra.gmra.mxu0 %vm23_vm1, %v17_v8  ;;  %307 = vmatprep.subr.mxu0 %v322_v0 }
   0xa   :  { %308 = vmatpush3.msra.mxu0 %v104_v9  ;;  %303 = vmatpush3.msra.mxu1 %v105_v10 }
   0xb   :  { %309 = vmatprep.subr.mxu0 %v322_v0  ;;  %304 = vmatprep.mubr.msk.f32.mxu1 %vm323_vm0, %v322_v0 }
   0xc   :  { %310 = vmatpush3.msra.mxu0 %v103_v11  ;;  %315 = vmatprep.mubr.msk.f32.mxu0 %vm323_vm0, %v322_v0 }
   0xd   :  { %311 = vmatprep.subr.mxu0 %v322_v0  ;;  %305 = vmatmul.mubr.msk.f32.vlgmr.msra.gmra.mxu1 %vm23_vm1, %v18_v12 }
   0xe   :  { %312 = vmatpush3.msra.mxu0 %v102_v13 }
   0xf   :  { %313 = vmatprep.subr.mxu0 %v322_v0 }
  0x10   :  { %314 = vmatpush3.msra.mxu0 %v101_v14 }
  0x11   :  { %316 = vmatmul.mubr.msk.f32.vlgmr.msra.gmra.mxu0 %vm23_vm1, %v17_v8 }
  0xc9   :  { %v93_v15 = vpop.f32.mrf.mxu0 }
  0xca   :  { %v97_v16 = vmul.f32 %v93_v15, %v18_v12 }
  0xcb   :  { %v295_v17 = vpop.f32.mrf.mxu0 }
  0xcc   :  { %v98_v18 = vsel %vm23_vm1, %v97_v16, 0.0 }
  0xcd   :  { %99 = vadd.xlane.f32.xlu0 %v98_v18  ;;  %v179_v19 = vpop.f32.mrf.mxu1 }
  0xcf   :  { %v306_v20 = vpop.f32.mrf.mxu1 }
  0xd1   :  { %v249_v21 = vpop.f32.mrf.mxu0 }
  0xd2   :  { %v250_v22 = vadd.f32 %v249_v21, %v179_v19 }
  0xd3   :  { %v317_v23 = vpop.f32.mrf.mxu0 }
 0x156   :  { %v100_v24 = vpop.xlane.xlu0 %99 }
 0x157   :  { %v253_v26 = vadd.f32 %v250_v22, %v100_v24 }
 0x159   :  { %v258_v27 = vadd.f32 %v269_v25, %v253_v26 }
 0x15b   :  { %320 = vtanh.f32 %v258_v27 }
 0x168   :  { %v321_v28 = vpop.eup %320 }
 0x169   :  { %261 = vst.msk [vmem:[%s408_s4] sm:$0xff] %vm260_vm2, %v321_v28 }

</bundles_post_ra>
